<compile_context>
chip_gen: v7x
topology: tpu7x:2x2x1
jax: 0.10.0
libtpu: 0.0.40
codegen_flags: <defaults>
</compile_context>

<pallas_src>
import jax
import jax.numpy as jnp
from jax.experimental import pallas as pl
from jax.experimental.pallas import tpu as pltpu

MODEL_NAME = "convnext_tiny"
OUTPUT_DIM = 768            # IMAGE_FEATURE_DIMS['convnext_tiny']
STEM_DIM = 128              # simplified stem width (real convnext_tiny stem = 96)
PATCH = 4                   # ConvNeXt patchify stem: 4x4 conv, stride 4
IN_CHANS = 3
PATCH_DIM = IN_CHANS * PATCH * PATCH   # 48
MAX_TOK_TILE = 8192         # tokens per grid step; whole T in one block when it fits


def _elementwise_dtype():
    """bf16 bias/GELU on bf16-capable VPUs (v6e/v7x); f32 elsewhere (v5e and older)."""
    try:
        kind = jax.devices()[0].device_kind.lower()
    except Exception:
        return jnp.float32
    return jnp.bfloat16 if ("v6" in kind or "v7" in kind) else jnp.float32


# ---------------------------------------------------------------- kernel ----

def _stem_pool_kernel(inv_tok_ref, x_ref, w_stem_ref, b_stem_ref, o_ref, acc_ref):
    """Fused patchify-stem matmul + GELU + token-mean pool (transposed layout).

    inv_tok_ref : (1,)                  f32 SMEM  -- 1 / num_tokens
    x_ref       : (PATCH_DIM, tile_tok) bf16      -- token tile, lane-dense tokens
    w_stem_ref  : (STEM_DIM, PATCH_DIM) bf16
    b_stem_ref  : (STEM_DIM, 1)         bf16/f32  -- elementwise dtype per chip gen
    o_ref       : (STEM_DIM, 1)         f32       -- resident across token axis
    acc_ref     : (STEM_DIM, 1)         f32 VMEM scratch (running token sum)

    NOTE: correctness of the accumulator reset requires the token axis to be the
    LAST (innermost, 'arbitrary') grid dim so t == 0 fires before any accumulation
    for each image.
    """
    t = pl.program_id(1)

    @pl.when(t == 0)
    def _():
        acc_ref[...] = jnp.zeros_like(acc_ref)

    # (128, 48) bf16 @ (48, tile_tok) bf16 -> (128, tile_tok) f32 on the MXU.
    h = jnp.dot(w_stem_ref[...], x_ref[...], preferred_element_type=jnp.float32)
    # TODO(synk): timm ConvNeXt uses exact (erf) GELU; tanh-approx GELU keeps the
    # Mosaic lowering simple and the backbone here is a synthetic stand-in.
    h = jax.nn.gelu(h.astype(b_stem_ref.dtype) + b_stem_ref[...])
    # Token-sum pool: last-axis (lane) reduction on the XLU, accumulated in f32.
    # With the raised token tile there is usually a single step per image, so the
    # narrow (128,1) accumulator RMW happens once per image.
    acc_ref[...] += jnp.sum(h.astype(jnp.float32), axis=-1, keepdims=True)

    @pl.when(t == pl.num_programs(1) - 1)
    def _():
        o_ref[...] = acc_ref[...] * inv_tok_ref[0]


# --------------------------------------------------------------- wrappers ---

def _choose_tile_tok(n_tok, cap=MAX_TOK_TILE):
    """Whole T when it fits; else the largest multiple-of-128 divisor <= cap."""
    if n_tok <= cap:
        return n_tok
    for t in range(cap - cap % 128, 127, -128):
        if n_tok % t == 0:
            return t
    # TODO(synk): pad T and mask the mean instead of a single full-T block.
    return n_tok


def fused_stem_pool(tokens_t, w_stem_t, b_stem):
    """tokens_t: (B, PATCH_DIM, T) bf16 -> pooled stem features (B, STEM_DIM) f32."""
    B, _, T = tokens_t.shape
    tile_tok = _choose_tile_tok(T)
    n_tiles = T // tile_tok
    inv_tok = jnp.full((1,), 1.0 / T, jnp.float32)

    flops = 2 * B * T * PATCH_DIM * STEM_DIM
    bytes_accessed = (tokens_t.size * tokens_t.dtype.itemsize
                      + w_stem_t.size * w_stem_t.dtype.itemsize
                      + b_stem.size * b_stem.dtype.itemsize
                      + B * STEM_DIM * 4)

    pooled = pl.pallas_call(
        _stem_pool_kernel,
        out_shape=jax.ShapeDtypeStruct((B, STEM_DIM, 1), jnp.float32),
        grid=(B, n_tiles),
        in_specs=[
            pl.BlockSpec(memory_space=pltpu.MemorySpace.SMEM),                 # 1/T
            pl.BlockSpec((None, PATCH_DIM, tile_tok), lambda b, t: (b, 0, t)),  # xT
            pl.BlockSpec((STEM_DIM, PATCH_DIM), lambda b, t: (0, 0)),           # w
            pl.BlockSpec((STEM_DIM, 1), lambda b, t: (0, 0)),                   # bias
        ],
        out_specs=pl.BlockSpec((None, STEM_DIM, 1), lambda b, t: (b, 0, 0)),
        scratch_shapes=[pltpu.VMEM((STEM_DIM, 1), jnp.float32)],
        compiler_params=pltpu.CompilerParams(
            dimension_semantics=("parallel", "arbitrary")),
        cost_estimate=pl.CostEstimate(flops=flops,
                                      transcendentals=B * T * STEM_DIM,
                                      bytes_accessed=bytes_accessed),
    )(inv_tok, tokens_t, w_stem_t, b_stem)
    return pooled[:, :, 0]


def patch_tokens_t(x_nchw):
    """NCHW image -> (B, PATCH_DIM, T) tokens-last layout (one fused XLA pass).

    Patch dim ordered (c, dy, dx); tokens are (hp, wp) row-major.  Tokens-last gives
    the kernel lane-dense streaming loads (128/128 lanes vs 48/128 with (T, 48)).
    """
    B, C, H, W = x_nchw.shape
    assert H % PATCH == 0 and W % PATCH == 0, "image size must be a multiple of 4"
    Hp, Wp = H // PATCH, W // PATCH
    x = x_nchw.reshape(B, C, Hp, PATCH, Wp, PATCH)
    x = jnp.transpose(x, (0, 1, 3, 5, 2, 4))          # (B, C, dy, dx, Hp, Wp)
    return x.reshape(B, C * PATCH * PATCH, Hp * Wp)


@jax.jit
def _forward(x, w_stem_t, b_stem, w_proj, b_proj):
    # TODO(synk): accepting NHWC / pre-tokenized bf16 input upstream would delete this
    # transpose+cast pass (the only non-kernel HBM round trip left).
    tokens_t = patch_tokens_t(x).astype(jnp.bfloat16)          # (B, 48, T) bf16
    pooled = fused_stem_pool(tokens_t, w_stem_t, b_stem)       # (B, 128) f32
    # Final projection hoisted out of the per-image kernel: one batched dot on the
    # tiny pooled tensor (M=B fills the MXU better than per-image M=1).
    return jnp.dot(pooled, w_proj, preferred_element_type=jnp.float32) + b_proj


# ------------------------------------------------------------------ module ---

class ImageExtractor:
    """Pallas re-implementation of ImageExtractor.forward: images -> (B, num_features)."""

    def __init__(self, config):
        if not isinstance(config, dict):
            raise ValueError("ImageExtractor config must be a dict.")
        self.model_name = config.get("name", MODEL_NAME)
        params = dict(config.get("params", {}))
        self.pretrained = params.pop("pretrained", True)
        self.extra_params = params
        self.output_dim = OUTPUT_DIM
        self.ew_dtype = _elementwise_dtype()

        # TODO(synk): the real timm backbone (full ConvNeXt stages / pretrained
        # weights) has no in-script equivalent; a ConvNeXt-style patchify stem
        # + GELU + global-average-pool + linear projection stands in for
        # backbone(x) -> (B, num_features), with deterministic random weights.
        key = jax.random.PRNGKey(42)
        k1, k2, k3, k4 = jax.random.split(key, 4)
        # MXU operands in bf16; bias/GELU in the per-generation elementwise dtype;
        # pooling and the hoisted projection stay in f32.
        self.w_stem_t = (jax.random.normal(k1, (STEM_DIM, PATCH_DIM), jnp.float32)
                         / jnp.sqrt(PATCH_DIM)).astype(jnp.bfloat16)
        self.b_stem = (jax.random.normal(k2, (STEM_DIM, 1), jnp.float32)
                       * 0.01).astype(self.ew_dtype)
        self.w_proj = (jax.random.normal(k3, (STEM_DIM, OUTPUT_DIM), jnp.float32)
                       / jnp.sqrt(STEM_DIM))
        self.b_proj = jax.random.normal(k4, (1, OUTPUT_DIM), jnp.float32) * 0.01

    def __call__(self, x):
        return _forward(x, self.w_stem_t, self.b_stem, self.w_proj, self.b_proj)


# -------------------------------------------------------------------- main ---

if __name__ == "__main__":
    key = jax.random.PRNGKey(0)
    # Small image batch consistent with the module contract: NCHW, 3 channels.
    x = jax.random.normal(key, (2, 3, 32, 32), jnp.float32)

    extractor = ImageExtractor({"name": MODEL_NAME, "params": {"pretrained": False}})
    feats = jax.block_until_ready(extractor(x))
    assert feats.shape == (2, OUTPUT_DIM), feats.shape

    # Pure-JAX reference of the same synthetic backbone (same dtype path).
    tok = patch_tokens_t(x).astype(jnp.bfloat16)                       # (B, 48, T)
    h = jnp.einsum("nk,bkt->bnt", extractor.w_stem_t, tok,
                   preferred_element_type=jnp.float32)
    h = jax.nn.gelu(h.astype(extractor.ew_dtype) + extractor.b_stem[None])
    pooled = jnp.mean(h.astype(jnp.float32), axis=-1)                  # (B, 128)
    ref = (jnp.dot(pooled, extractor.w_proj, preferred_element_type=jnp.float32)
           + extractor.b_proj)
    max_err = float(jnp.max(jnp.abs(feats - ref)))
    assert jnp.allclose(feats, ref, atol=2e-2, rtol=2e-2), f"mismatch vs reference: {max_err}"

    print("KERNEL_OK")
</pallas_src>

<mosaic_0001>
module attributes {stable_mosaic.version = 11 : i64} {
  func.func @_stem_pool_kernel(%arg0: i32, %arg1: i32, %arg2: memref<1xf32, #tpu.memory_space<smem>>, %arg3: memref<1x48x64xbf16, #tpu.memory_space<vmem>>, %arg4: memref<128x48xbf16, #tpu.memory_space<vmem>>, %arg5: memref<128x1xf32, #tpu.memory_space<vmem>>, %arg6: memref<1x128x1xf32, #tpu.memory_space<vmem>>, %arg7: memref<128x1xf32, #tpu.memory_space<vmem>>) attributes {dimension_semantics = [#tpu.dimension_semantics<parallel>, #tpu.dimension_semantics<arbitrary>], iteration_bounds = array<i64: 2, 1>, scalar_prefetch = 0 : i64, scratch_operands = 1 : i64, tpu.core_type = #tpu.core_type<tc>, window_params = [{transform_indices = @transform_0, window_bounds = array<i64: 1>}, {transform_indices = @transform_1, window_bounds = array<i64: 1, 48, 64>}, {pipeline_mode = #tpu.pipeline_mode<synchronous>, transform_indices = @transform_2, window_bounds = array<i64: 128, 48>}, {pipeline_mode = #tpu.pipeline_mode<synchronous>, transform_indices = @transform_3, window_bounds = array<i64: 128, 1>}, {transform_indices = @transform_4, window_bounds = array<i64: 1, 128, 1>}]} {
    %c0_i32 = arith.constant 0 : i32
    %0 = arith.cmpi eq, %arg1, %c0_i32 : i32
    %1 = arith.extui %0 : i1 to i32
    %c0_i32_0 = arith.constant 0 : i32
    %2 = arith.cmpi ne, %1, %c0_i32_0 : i32
    scf.if %2 {
      %cst_18 = arith.constant 0.000000e+00 : f32
      %31 = vector.broadcast %cst_18 : f32 to vector<128x1xf32>
      %c0_19 = arith.constant 0 : index
      %c0_20 = arith.constant 0 : index
      %32 = vector.load %arg7[%c0_19, %c0_20] : memref<128x1xf32, #tpu.memory_space<vmem>>, vector<128x1xf32>
      tpu.vector_store %arg7[%c0_19, %c0_20], %31 {strides = array<i32>} : memref<128x1xf32, #tpu.memory_space<vmem>>, vector<128x1xf32>,
    } else {
    }
    %c0 = arith.constant 0 : index
    %c0_1 = arith.constant 0 : index
    %3 = vector.load %arg4[%c0, %c0_1] : memref<128x48xbf16, #tpu.memory_space<vmem>>, vector<128x48xbf16>
    %c0_2 = arith.constant 0 : index
    %c0_3 = arith.constant 0 : index
    %c0_4 = arith.constant 0 : index
    %4 = vector.load %arg3[%c0_2, %c0_3, %c0_4] : memref<1x48x64xbf16, #tpu.memory_space<vmem>>, vector<1x48x64xbf16>
    %5 = vector.shape_cast %4 : vector<1x48x64xbf16> to vector<48x64xbf16>
    %cst = arith.constant dense<0.000000e+00> : vector<128x64xf32>
    %6 = tpu.matmul %3, %5, %cst {dimension_numbers = #tpu.dot_dimension_numbers<[1], [0], [0], [1], [0, 0, 1, 1], [], []>} : vector<128x48xbf16>, vector<48x64xbf16>, vector<128x64xf32> -> vector<128x64xf32>
    %c0_5 = arith.constant 0 : index
    %c0_6 = arith.constant 0 : index
    %7 = vector.load %arg5[%c0_5, %c0_6] : memref<128x1xf32, #tpu.memory_space<vmem>>, vector<128x1xf32>
    %8 = vector.broadcast %7 : vector<128x1xf32> to vector<128x64xf32>
    %9 = arith.addf %6, %8 : vector<128x64xf32>
    %10 = arith.mulf %9, %9 : vector<128x64xf32>
    %11 = arith.mulf %9, %10 : vector<128x64xf32>
    %cst_7 = arith.constant 4.471500e-02 : f32
    %12 = vector.broadcast %cst_7 : f32 to vector<128x64xf32>
    %13 = arith.mulf %12, %11 : vector<128x64xf32>
    %14 = arith.addf %9, %13 : vector<128x64xf32>
    %cst_8 = arith.constant 0.797884583 : f32
    %15 = vector.broadcast %cst_8 : f32 to vector<128x64xf32>
    %16 = arith.mulf %15, %14 : vector<128x64xf32>
    %17 = math.tanh %16 : vector<128x64xf32>
    %cst_9 = arith.constant 1.000000e+00 : f32
    %18 = vector.broadcast %cst_9 : f32 to vector<128x64xf32>
    %19 = arith.addf %18, %17 : vector<128x64xf32>
    %cst_10 = arith.constant 5.000000e-01 : f32
    %20 = vector.broadcast %cst_10 : f32 to vector<128x64xf32>
    %21 = arith.mulf %20, %19 : vector<128x64xf32>
    %22 = arith.mulf %9, %21 : vector<128x64xf32>
    %c0_11 = arith.constant 0 : index
    %c0_12 = arith.constant 0 : index
    %23 = vector.load %arg7[%c0_11, %c0_12] : memref<128x1xf32, #tpu.memory_space<vmem>>, vector<128x1xf32>
    %cst_13 = arith.constant dense<0.000000e+00> : vector<128xf32>
    %24 = vector.multi_reduction <add>, %22, %cst_13 [1] : vector<128x64xf32> to vector<128xf32>
    %25 = vector.shape_cast %24 : vector<128xf32> to vector<128x1xf32>
    %26 = arith.addf %23, %25 : vector<128x1xf32>
    %c0_14 = arith.constant 0 : index
    %c0_15 = arith.constant 0 : index
    %27 = vector.load %arg7[%c0_14, %c0_15] : memref<128x1xf32, #tpu.memory_space<vmem>>, vector<128x1xf32>
    tpu.vector_store %arg7[%c0_14, %c0_15], %26 {strides = array<i32>} : memref<128x1xf32, #tpu.memory_space<vmem>>, vector<128x1xf32>,
    %c0_i32_16 = arith.constant 0 : i32
    %28 = arith.cmpi eq, %arg1, %c0_i32_16 : i32
    %29 = arith.extui %28 : i1 to i32
    %c0_i32_17 = arith.constant 0 : i32
    %30 = arith.cmpi ne, %29, %c0_i32_17 : i32
    scf.if %30 {
      %c0_18 = arith.constant 0 : index
      %c0_19 = arith.constant 0 : index
      %31 = vector.load %arg7[%c0_18, %c0_19] : memref<128x1xf32, #tpu.memory_space<vmem>>, vector<128x1xf32>
      %c0_20 = arith.constant 0 : index
      %32 = memref.load %arg2[%c0_20] : memref<1xf32, #tpu.memory_space<smem>>
      %33 = vector.broadcast %32 : f32 to vector<128x1xf32>
      %34 = arith.mulf %31, %33 : vector<128x1xf32>
      %c0_21 = arith.constant 0 : index
      %c0_22 = arith.constant 0 : index
      %c0_23 = arith.constant 0 : index
      %35 = vector.load %arg6[%c0_21, %c0_22, %c0_23] : memref<1x128x1xf32, #tpu.memory_space<vmem>>, vector<1x128x1xf32>
      %36 = vector.shape_cast %35 : vector<1x128x1xf32> to vector<128x1xf32>
      %37 = vector.shape_cast %34 : vector<128x1xf32> to vector<1x128x1xf32>
      tpu.vector_store %arg6[%c0_21, %c0_22, %c0_23], %37 {strides = array<i32>} : memref<1x128x1xf32, #tpu.memory_space<vmem>>, vector<1x128x1xf32>,
    } else {
    }
    return
  }
  func.func @transform_0(%arg0: i32, %arg1: i32) -> i32 {
    %c0_i32 = arith.constant 0 : i32
    %c0_i32_0 = arith.constant 0 : i32
    return %c0_i32 : i32
  }
  func.func @transform_1(%arg0: i32, %arg1: i32) -> (i32, i32, i32) {
    %c0_i32 = arith.constant 0 : i32
    %c0_i32_0 = arith.constant 0 : i32
    return %arg0, %c0_i32, %arg1 : i32, i32, i32
  }
  func.func @transform_2(%arg0: i32, %arg1: i32) -> (i32, i32) {
    %c0_i32 = arith.constant 0 : i32
    %c0_i32_0 = arith.constant 0 : i32
    %c0_i32_1 = arith.constant 0 : i32
    return %c0_i32, %c0_i32_0 : i32, i32
  }
  func.func @transform_3(%arg0: i32, %arg1: i32) -> (i32, i32) {
    %c0_i32 = arith.constant 0 : i32
    %c0_i32_0 = arith.constant 0 : i32
    %c0_i32_1 = arith.constant 0 : i32
    return %c0_i32, %c0_i32_0 : i32, i32
  }
  func.func @transform_4(%arg0: i32, %arg1: i32) -> (i32, i32, i32) {
    %c0_i32 = arith.constant 0 : i32
    %c0_i32_0 = arith.constant 0 : i32
    %c0_i32_1 = arith.constant 0 : i32
    return %arg0, %c0_i32, %c0_i32_0 : i32, i32, i32
  }
}

</mosaic_0001>

<bundles_post_ra>
// kernel: _forward.1
= control target key start
LH: loop header
LB: loop body
LE: loop exit
PB: predicated region body
PF: predicated region fallthrough
CT: control target
= control target key end

     0   :  { %s1101_s17 = smov 0   ;;  %s1103_s18 = smov 0   ;;  %s1433_s0 = inlined_call_operand.<no memory space> [shape: f32[1], index: 0, kind: input, shape index: {}]   ;;  %s1434_s1 = inlined_call_operand.vmem [shape: bf16[2,48,64], index: 1, kind: input, shape index: {}]   ;;  %s1435_s2 = inlined_call_operand.vmem [shape: bf16[128,48], index: 2, kind: input, shape index: {}]   ;;  %s1436_s3 = inlined_call_operand.vmem [shape: f32[128,1], index: 3, kind: input, shape index: {}]   ;;  %s1437_s4 = inlined_call_operand.vmem [shape: f32[2,128,1], index: 4, kind: output, shape index: {}]  }
   0x1   :  { %9 = sst [smem:[#allocation3]] %s1433_s0  ;;  %s1105_s19 = smov 0  }
   0x2 LB: > { %s27_s0 = sadd.s32 1, %s1065_s18  ;;  %p910_p0 = scmp.ge.s32.totalorder %s1069_s19, 1  ;;  %s1069_s19 = sphi %s1105_s19, %s15_s19   ;;  %s1065_s18 = sphi %s1103_s18, %s1439_s18   ;;  %s1061_s17 = sphi %s1101_s17, %s1438_s17  }
   0x3   : > { %p29_p1 = scmp.ge.s32.totalorder %s27_s0, 2  ;;  %p180_p2 = scmp.lt.s32.totalorder %s1069_s19, 3 }
   0x5   : > { %s1441_s0 = smov (%p29_p1, %s27_s0), 0  ;;  %p181_p3 = pnand %p910_p0, %p180_p2 }
   0x6   : > { %p209_p4 = scmp.lt.s32.totalorder (!%p181_p3), %s1061_s17, 1  ;;  %v1007_v0 = vld [vmem:[%s1435_s2] sm:$0xff] (!%p181_p3)   ;;  %vm420_vm0 = vcmask (!%p181_p3), 392192   ;;  %v1071_v2 = vmov (!%p181_p3), 0   ;;  %v268_v7 = vld [vmem:[%s1436_s3 + $0x10] sm:$0xff] (!%p181_p3)  ;;  %v267_v8 = vld [vmem:[%s1436_s3 + $0x8] sm:$0xff] (!%p181_p3) }
   0x7   : > { %184 = sbr.rel (%p181_p3) target bundleno = 467 (0x1d3), region = 36  ;;  %v1008_v1 = vld [vmem:[%s1435_s2 + $0x20] sm:$0xff] (!%p181_p3)   ;;  %953 = vmatprep.mubr.msk.bf16.mxu0 (!%p181_p3), %vm420_vm0, %v1007_v0  ;;  %1002 = vset.pattern.permute.xlu0 (!%p181_p3), %v1071_v2  ;;  %v269_v9 = vld [vmem:[%s1436_s3 + $0x18] sm:$0xff] (!%p181_p3)  ;;  %v1009_v10 = vld [vmem:[%s1435_s2 + $0x8] sm:$0xff] (!%p181_p3)   ;;  %vm227_vm1 = vcmask (!%p181_p3), 7168   ;;  %v1072_v28 = vmov (!%p181_p3), 0.0  }
   0x8   : > { %961 = vmatprep.mubr.msk.bf16.mxu1 (!%p181_p3), %vm420_vm0, %v1008_v1  ;;  %1003 = vset.pattern.permute.xlu1 (!%p181_p3), %v1071_v2  ;;  %v266_v6 = vld [vmem:[%s1436_s3] sm:$0xff] (!%p181_p3)  ;;  %v1010_v11 = vld [vmem:[%s1435_s2 + $0x28] sm:$0xff] (!%p181_p3)   ;;  %v1011_v14 = vld [vmem:[%s1435_s2 + $0x10] sm:$0xff] (!%p181_p3)   ;;  %238 = vst.msk [vmem:[#allocation2 + $0x50] sm:$0xff] (!%p181_p3), %vm227_vm1, %v1072_v28  ;;  %vm702_vm2 = vcmask (!%p181_p3), 523264   ;;  %s803_s26 = sld [smem:[#allocation3]] (!%p181_p3) }
   0x9   : > { %284 = vperm.xlu0 (!%p181_p3), %1002, %v266_v6   ;;  %294 = vperm.xlu1 (!%p181_p3), %1003, %v268_v7   ;;  %v270_v12 = vld [vmem:[%s1436_s3 + $0x20] sm:$0xff] (!%p181_p3)  ;;  %v271_v13 = vld [vmem:[%s1436_s3 + $0x28] sm:$0xff] (!%p181_p3)  ;;  %v1012_v15 = vld [vmem:[%s1435_s2 + $0x30] sm:$0xff] (!%p181_p3)   ;;  %228 = vst.msk [vmem:[#allocation2] sm:$0xff] (!%p181_p3), %vm227_vm1, %v1072_v28 }
   0xa   : > { %v272_v16 = vld [vmem:[%s1436_s3 + $0x30] sm:$0xff] (!%p181_p3)  ;;  %v273_v17 = vld [vmem:[%s1436_s3 + $0x38] sm:$0xff] (!%p181_p3)  ;;  %v274_v20 = vld [vmem:[%s1436_s3 + $0x40] sm:$0xff] (!%p181_p3)  ;;  %229 = vst.msk [vmem:[#allocation2 + $0x8] sm:$0xff] (!%p181_p3), %vm227_vm1, %v1072_v28 }
   0xb   : > { %v1013_v18 = vld [vmem:[%s1435_s2 + $0x18] sm:$0xff] (!%p181_p3)   ;;  %v275_v21 = vld [vmem:[%s1436_s3 + $0x48] sm:$0xff] (!%p181_p3)  ;;  %v276_v22 = vld [vmem:[%s1436_s3 + $0x50] sm:$0xff] (!%p181_p3)  ;;  %230 = vst.msk [vmem:[#allocation2 + $0x10] sm:$0xff] (!%p181_p3), %vm227_vm1, %v1072_v28 }
   0xc   : > { %v1014_v19 = vld [vmem:[%s1435_s2 + $0x38] sm:$0xff] (!%p181_p3)   ;;  %v278_v24 = vld [vmem:[%s1436_s3 + $0x60] sm:$0xff] (!%p181_p3)  ;;  %v279_v25 = vld [vmem:[%s1436_s3 + $0x68] sm:$0xff] (!%p181_p3)  ;;  %231 = vst.msk [vmem:[#allocation2 + $0x18] sm:$0xff] (!%p181_p3), %vm227_vm1, %v1072_v28 }
   0xd   : > { %289 = vperm.xlu0 (!%p181_p3), %1002, %v267_v8   ;;  %299 = vperm.xlu1 (!%p181_p3), %1003, %v269_v9   ;;  %v277_v23 = vld [vmem:[%s1436_s3 + $0x58] sm:$0xff] (!%p181_p3)  ;;  %v280_v26 = vld [vmem:[%s1436_s3 + $0x70] sm:$0xff] (!%p181_p3)  ;;  %232 = vst.msk [vmem:[#allocation2 + $0x20] sm:$0xff] (!%p181_p3), %vm227_vm1, %v1072_v28  ;;  %233 = vst.msk [vmem:[#allocation2 + $0x28] sm:$0xff] (!%p181_p3), %vm227_vm1, %v1072_v28 }
   0xe   : > { %s1443_s17 = smov (!%p209_p4, %s1061_s17), 1  ;;  %v281_v27 = vld [vmem:[%s1436_s3 + $0x78] sm:$0xff]  ;;  %234 = vst.msk [vmem:[#allocation2 + $0x30] sm:$0xff] %vm227_vm1, %v1072_v28  ;;  %235 = vst.msk [vmem:[#allocation2 + $0x38] sm:$0xff] %vm227_vm1, %v1072_v28 }
   0xf   : > { %s975_s24 = smul.u32 24, %s1443_s17  ;;  %236 = vst.msk [vmem:[#allocation2 + $0x40] sm:$0xff] %vm227_vm1, %v1072_v28  ;;  %237 = vst.msk [vmem:[#allocation2 + $0x48] sm:$0xff] %vm227_vm1, %v1072_v28 }
  0x10   : > { %239 = vst.msk [vmem:[#allocation2 + $0x58] sm:$0xff] %vm227_vm1, %v1072_v28  ;;  %240 = vst.msk [vmem:[#allocation2 + $0x60] sm:$0xff] %vm227_vm1, %v1072_v28 }
  0x11   : > { %s216_s27 = scalar_lea.vmem %s1434_s1, %s975_s24  ;;  %304 = vperm.xlu0 %1002, %v270_v12   ;;  %309 = vperm.xlu1 %1003, %v271_v13   ;;  %241 = vst.msk [vmem:[#allocation2 + $0x68] sm:$0xff] %vm227_vm1, %v1072_v28  ;;  %242 = vst.msk [vmem:[#allocation2 + $0x70] sm:$0xff] %vm227_vm1, %v1072_v28 }
  0x12   : > { %v1004_v3 = vld [vmem:[%s216_s27] sm:$0xff]   ;;  %v1005_v4 = vld [vmem:[%s216_s27 + $0x8] sm:$0xff]   ;;  %v1006_v5 = vld [vmem:[%s216_s27 + $0x10] sm:$0xff]   ;;  %243 = vst.msk [vmem:[#allocation2 + $0x78] sm:$0xff] %vm227_vm1, %v1072_v28  ;;  %s935_s27 = sshll.u32 %s1443_s17, 7 }
  0x13   : > { %947 = vmatprep.subr.bf16.mxu0 %v1004_v3  ;;  %969 = vmatprep.subr.bf16.mxu1 %v1004_v3  ;;  %s1362_s30 = scalar_lea.vmem %s1437_s4, %s935_s27 }
  0x14   : > { %948 = vmatpush3.bf16.msra.mxu0 %v1004_v3  ;;  %972 = vmatpush3.bf16.msra.mxu1 %v1004_v3 }
  0x15   : > { %949 = vmatprep.subr.bf16.mxu0 %v1005_v4  ;;  %970 = vmatprep.subr.bf16.mxu1 %v1005_v4 }
  0x16   : > { %314 = vperm.xlu0 %1002, %v272_v16   ;;  %319 = vperm.xlu1 %1003, %v273_v17  }
  0x18   : > { %950 = vmatpush3.bf16.msra.mxu0 %v1005_v4  ;;  %973 = vmatpush3.bf16.msra.mxu1 %v1005_v4 }
  0x19   : > { %951 = vmatprep.subr.bf16.mxu0 %v1006_v5  ;;  %971 = vmatprep.subr.bf16.mxu1 %v1006_v5 }
  0x1a   : > { %324 = vperm.xlu0 %1002, %v274_v20   ;;  %329 = vperm.xlu1 %1003, %v275_v21  }
  0x1c   : > { %952 = vmatpush3.bf16.msra.mxu0 %v1006_v5  ;;  %974 = vmatpush3.bf16.msra.mxu1 %v1006_v5 }
  0x1e   : > { %334 = vperm.xlu0 %1002, %v276_v22   ;;  %339 = vperm.xlu1 %1003, %v277_v23  }
  0x1f   : > { %954 = vmatmul.mubr.msk.bf16.vlgmr.msra.gmra.mrb[0].mxu0 %vm420_vm0, %v1009_v10  ;;  %962 = vmatmul.mubr.msk.bf16.vlgmr.msra.gmra.mrb[0].mxu1 %vm420_vm0, %v1010_v11 }
  0x20   : > { %957 = vmatprep.mubr.msk.bf16.mxu0 %vm420_vm0, %v1011_v14  ;;  %965 = vmatprep.mubr.msk.bf16.mxu1 %vm420_vm0, %v1012_v15 }
  0x22   : > { %344 = vperm.xlu0 %1002, %v278_v24   ;;  %349 = vperm.xlu1 %1003, %v279_v25  }
  0x26   : > { %354 = vperm.xlu0 %1002, %v280_v26   ;;  %359 = vperm.xlu1 %1003, %v281_v27  }
  0x27   : > { %958 = vmatmul.mubr.msk.bf16.gmra.mrb[4].mxu0 %vm420_vm0, %v1013_v18  ;;  %966 = vmatmul.mubr.msk.bf16.gmra.mrb[4].mxu1 %vm420_vm0, %v1014_v19 }
  0x88   : > { %v285_v29 = vpop.permute.xlu0 %284  ;;  %v295_v30 = vpop.permute.xlu1 %294 }
  0x8c   : > { %v290_v31 = vpop.permute.xlu0 %289  ;;  %v300_v32 = vpop.permute.xlu1 %299 }
  0x90   : > { %v305_v33 = vpop.permute.xlu0 %304  ;;  %v1221_v34 = vpop.permute.xlu1 %309 }
  0x95   : > { %v315_v35 = vpop.permute.xlu0 %314  ;;  %v320_v36 = vpop.permute.xlu1 %319 }
  0x99   : > { %v325_v37 = vpop.permute.xlu0 %324  ;;  %v330_v38 = vpop.permute.xlu1 %329 }
  0x9d   : > { %v335_v39 = vpop.permute.xlu0 %334  ;;  %v340_v40 = vpop.permute.xlu1 %339 }
  0xa1   : > { %v345_v60 = vpop.permute.xlu0 %344  ;;  %v350_v21 = vpop.permute.xlu1 %349 }
  0xa5   : > { %v355_v22 = vpop.permute.xlu0 %354 }
  0xf2   : > { %v955_v41 = vpop.f32.mrb[0].mxu0  ;;  %v963_v42 = vpop.f32.mrb[0].mxu1 }
  0xf3   : > { %v1223_v43 = vadd.f32 %v955_v41, %v295_v30  ;;  %v1225_v44 = vadd.f32 %v963_v42, %v335_v39  ;;  %v479_v45 = vpop.f32.mrb[1].mxu0  ;;  %v511_v46 = vpop.f32.mrb[1].mxu1 }
  0xf4   : > { %v1227_v47 = vadd.f32 %v479_v45, %v285_v29  ;;  %v1229_v48 = vadd.f32 %v511_v46, %v325_v37  ;;  %v956_v49 = vpop.f32.mrb[2].mxu0  ;;  %v964_v50 = vpop.f32.mrb[2].mxu1 }
  0xf5   : > { %v544_v51 = vmul.f32 %v1223_v43, %v1223_v43  ;;  %v482_v52 = vpop.f32.mrb[3].mxu0  ;;  %v514_v53 = vpop.f32.mrb[3].mxu1  ;;  %v1233_v54 = vadd.f32 %v956_v49, %v300_v32  ;;  %v1235_v55 = vadd.f32 %v964_v50, %v340_v40  ;;  %v552_v57 = vmul.f32 %v1225_v44, %v1225_v44 }
  0xf6   : > { %v1237_v56 = vadd.f32 %v482_v52, %v290_v31  ;;  %v542_v58 = vmul.f32 %v1227_v47, %v1227_v47  ;;  %v550_v59 = vmul.f32 %v1229_v48, %v1229_v48  ;;  %v1248_v63 = vadd.f32 %v514_v53, %v330_v38 }
  0xf7   : > { %v560_v61 = vmul.f32 %v544_v51, %v1223_v43  ;;  %v545_v0 = vmul.f32 %v1233_v54, %v1233_v54  ;;  %v553_v1 = vmul.f32 %v1235_v55, %v1235_v55  ;;  %v568_v4 = vmul.f32 %v552_v57, %v1225_v44  ;;  %v360_v51 = vpop.permute.xlu1 %359 }
  0xf8   : > { %v543_v62 = vmul.f32 %v1237_v56, %v1237_v56  ;;  %v558_v5 = vmul.f32 %v542_v58, %v1227_v47  ;;  %v566_v8 = vmul.f32 %v550_v59, %v1229_v48  ;;  %v551_v13 = vmul.f32 %v1248_v63, %v1248_v63 }
  0xf9   : > { %v576_v11 = vmul.f32 0.044715, %v560_v61  ;;  %v561_v17 = vmul.f32 %v545_v0, %v1233_v54  ;;  %v569_v18 = vmul.f32 %v553_v1, %v1235_v55  ;;  %v584_v23 = vmul.f32 0.044715, %v568_v4 }
  0xfa   : > { %v959_v2 = vpop.f32.mrb[4].mxu0  ;;  %v967_v3 = vpop.f32.mrb[4].mxu1  ;;  %v559_v12 = vmul.f32 %v543_v62, %v1237_v56  ;;  %v574_v24 = vmul.f32 0.044715, %v558_v5  ;;  %v582_v27 = vmul.f32 0.044715, %v566_v8  ;;  %v567_v32 = vmul.f32 %v551_v13, %v1248_v63 }
  0xfb   : > { %v495_v6 = vpop.f32.mrb[5].mxu0  ;;  %v527_v7 = vpop.f32.mrb[5].mxu1  ;;  %v1260_v14 = vadd.f32 %v959_v2, %v315_v35  ;;  %v1272_v28 = vadd.f32 %v967_v3, %v355_v22  ;;  %v577_v37 = vmul.f32 0.044715, %v561_v17  ;;  %v592_v40 = vadd.f32 %v576_v11, %v1223_v43 }
  0xfc   : > { %v960_v9 = vpop.f32.mrb[6].mxu0  ;;  %v968_v10 = vpop.f32.mrb[6].mxu1  ;;  %v1264_v19 = vadd.f32 %v495_v6, %v305_v33  ;;  %v1266_v20 = vadd.f32 %v527_v7, %v345_v60  ;;  %v575_v31 = vmul.f32 0.044715, %v559_v12  ;;  %v600_v41 = vadd.f32 %v584_v23, %v1225_v44 }
  0xfd   : > { %v498_v15 = vpop.f32.mrb[7].mxu0  ;;  %v530_v16 = vpop.f32.mrb[7].mxu1  ;;  %v548_v25 = vmul.f32 %v1260_v14, %v1260_v14  ;;  %v1270_v26 = vadd.f32 %v960_v9, %v320_v36  ;;  %v585_v36 = vmul.f32 0.044715, %v569_v18  ;;  %v590_v46 = vadd.f32 %v574_v24, %v1227_v47 }
  0xfe   : > { %v546_v29 = vmul.f32 %v1264_v19, %v1264_v19  ;;  %v554_v30 = vmul.f32 %v1266_v20, %v1266_v20  ;;  %v1281_v35 = vadd.f32 %v498_v15, %v1221_v34  ;;  %v1288_v45 = vadd.f32 %v530_v16, %v350_v21 }
  0xff   : > { %v564_v33 = vmul.f32 %v548_v25, %v1260_v14  ;;  %v549_v39 = vmul.f32 %v1270_v26, %v1270_v26  ;;  %v598_v49 = vadd.f32 %v582_v27, %v1229_v48  ;;  %v556_v34 = vmul.f32 %v1272_v28, %v1272_v28 }
 0x100   : > { %v562_v38 = vmul.f32 %v546_v29, %v1264_v19  ;;  %v570_v50 = vmul.f32 %v554_v30, %v1266_v20  ;;  %v591_v52 = vadd.f32 %v575_v31, %v1237_v56  ;;  %v583_v53 = vmul.f32 0.044715, %v567_v32 }
 0x101   : > { %v580_v42 = vmul.f32 0.044715, %v564_v33  ;;  %v547_v58 = vmul.f32 %v1281_v35, %v1281_v35  ;;  %v593_v59 = vadd.f32 %v577_v37, %v1233_v54  ;;  %v601_v60 = vadd.f32 %v585_v36, %v1235_v55 }
 0x102   : > { %v578_v57 = vmul.f32 0.044715, %v562_v38  ;;  %v565_v61 = vmul.f32 %v549_v39, %v1270_v26  ;;  %v1301_v62 = vadd.f32 %v968_v10, %v360_v51  ;;  %v555_v1 = vmul.f32 %v1288_v45, %v1288_v45 }
 0x103   : > { %v596_v0 = vadd.f32 %v580_v42, %v1260_v14  ;;  %v616_v2 = vmul.f32 0.7978846, %v600_v41  ;;  %v608_v3 = vmul.f32 0.7978846, %v592_v40  ;;  %v572_v4 = vmul.f32 %v556_v34, %v1272_v28 }
 0x104   : > { %v586_v5 = vmul.f32 0.044715, %v570_v50  ;;  %v614_v6 = vmul.f32 0.7978846, %v598_v49  ;;  %v606_v7 = vmul.f32 0.7978846, %v590_v46  ;;  %v594_v8 = vadd.f32 %v578_v57, %v1264_v19 }
 0x105   : > { %v563_v9 = vmul.f32 %v547_v58, %v1281_v35  ;;  %1015 = vtanh.f32 %v616_v2  ;;  %v607_v11 = vmul.f32 0.7978846, %v591_v52  ;;  %v599_v10 = vadd.f32 %v583_v53, %v1248_v63 }
 0x106   : > { %v581_v12 = vmul.f32 0.044715, %v565_v61  ;;  %1017 = vtanh.f32 %v608_v3  ;;  %v609_v13 = vmul.f32 0.7978846, %v593_v59  ;;  %v557_v15 = vmul.f32 %v1301_v62, %v1301_v62 }
 0x107   : > { %v571_v16 = vmul.f32 %v555_v1, %v1288_v45  ;;  %1019 = vtanh.f32 %v614_v6  ;;  %v612_v17 = vmul.f32 0.7978846, %v596_v0  ;;  %v588_v18 = vmul.f32 0.044715, %v572_v4 }
 0x108   : > { %1021 = vtanh.f32 %v606_v7  ;;  %v617_v21 = vmul.f32 0.7978846, %v601_v60  ;;  %v602_v22 = vadd.f32 %v586_v5, %v1266_v20  ;;  %v579_v23 = vmul.f32 0.044715, %v563_v9 }
 0x109   : > { %1023 = vtanh.f32 %v607_v11  ;;  %v610_v24 = vmul.f32 0.7978846, %v594_v8  ;;  %v597_v25 = vadd.f32 %v581_v12, %v1270_v26  ;;  %v615_v27 = vmul.f32 0.7978846, %v599_v10 }
 0x10a   : > { %1025 = vtanh.f32 %v609_v13  ;;  %v573_v29 = vmul.f32 %v557_v15, %v1301_v62  ;;  %v587_v30 = vmul.f32 0.044715, %v571_v16  ;;  %v604_v31 = vadd.f32 %v588_v18, %v1272_v28 }
 0x10b   : > { %1027 = vtanh.f32 %v612_v17  ;;  %v595_v32 = vadd.f32 %v579_v23, %v1281_v35  ;;  %v618_v33 = vmul.f32 0.7978846, %v602_v22  ;;  %v613_v37 = vmul.f32 0.7978846, %v597_v25 }
 0x10c   : > { %1029 = vtanh.f32 %v617_v21  ;;  %v589_v38 = vmul.f32 0.044715, %v573_v29  ;;  %v603_v39 = vadd.f32 %v587_v30, %v1288_v45  ;;  %v620_v42 = vmul.f32 0.7978846, %v604_v31 }
 0x10d   : > { %1031 = vtanh.f32 %v610_v24  ;;  %v611_v34 = vmul.f32 0.7978846, %v595_v32 }
 0x10e   : > { %1033 = vtanh.f32 %v615_v27  ;;  %v605_v57 = vadd.f32 %v589_v38, %v1301_v62  ;;  %v619_v60 = vmul.f32 0.7978846, %v603_v39 }
 0x10f   : > { %v1016_v36 = vpop.eup %1015  ;;  %1035 = vtanh.f32 %v618_v33 }
 0x110   : > { %v1018_v40 = vpop.eup %1017  ;;  %v648_v41 = vadd.f32 1.0, %v1016_v36  ;;  %1037 = vtanh.f32 %v613_v37 }
 0x111   : > { %v1020_v46 = vpop.eup %1019  ;;  %v640_v49 = vadd.f32 1.0, %v1018_v40  ;;  %1039 = vtanh.f32 %v620_v42 }
 0x112   : > { %v1022_v50 = vpop.eup %1021  ;;  %v664_v51 = vmul.f32 0.5, %v648_v41  ;;  %v646_v52 = vadd.f32 1.0, %v1020_v46  ;;  %1041 = vtanh.f32 %v611_v34 }
 0x113   : > { %v1024_v53 = vpop.eup %1023  ;;  %v656_v58 = vmul.f32 0.5, %v640_v49  ;;  %v638_v59 = vadd.f32 1.0, %v1022_v50  ;;  %1043 = vtanh.f32 %v619_v60 }
 0x114   : > { %v1026_v61 = vpop.eup %1025  ;;  %v680_v0 = vmul.f32 %v664_v51, %v1225_v44  ;;  %v662_v1 = vmul.f32 0.5, %v646_v52  ;;  %v639_v2 = vadd.f32 1.0, %v1024_v53 }
 0x115   : > { %v1028_v3 = vpop.eup %1027  ;;  %v672_v4 = vmul.f32 %v656_v58, %v1223_v43  ;;  %v654_v5 = vmul.f32 0.5, %v638_v59  ;;  %v641_v6 = vadd.f32 1.0, %v1026_v61  ;;  %v621_v43 = vmul.f32 0.7978846, %v605_v57 }
 0x116   : > { %v1030_v7 = vpop.eup %1029  ;;  %v733_v8 = vsel %vm702_vm2, %v680_v0, 0.0  ;;  %v678_v9 = vmul.f32 %v662_v1, %v1229_v48  ;;  %v655_v11 = vmul.f32 0.5, %v639_v2  ;;  %v644_v10 = vadd.f32 1.0, %v1028_v3 }
 0x117   : > { %v1032_v12 = vpop.eup %1031  ;;  %734 = vadd.xlane.f32.xlu1 %v733_v8  ;;  %v709_v44 = vsel %vm702_vm2, %v672_v4, 0.0  ;;  %v670_v13 = vmul.f32 %v654_v5, %v1227_v47  ;;  %v657_v15 = vmul.f32 0.5, %v641_v6  ;;  %v649_v16 = vadd.f32 1.0, %v1030_v7  ;;  %v688_v8 = vld [vmem:[#allocation2 + $0x10] sm:$0xff] }
 0x118   : > { %v1034_v17 = vpop.eup %1033  ;;  %710 = vadd.xlane.f32.xlu0 %v709_v44  ;;  %v727_v18 = vsel %vm702_vm2, %v678_v9, 0.0  ;;  %v671_v21 = vmul.f32 %v655_v11, %v1237_v56  ;;  %v660_v22 = vmul.f32 0.5, %v644_v10  ;;  %v642_v48 = vadd.f32 1.0, %v1032_v12  ;;  %v694_v44 = vld [vmem:[#allocation2 + $0x40] sm:$0xff] }
 0x119   : > { %v1036_v23 = vpop.eup %1035  ;;  %v703_v24 = vsel %vm702_vm2, %v670_v13, 0.0  ;;  %v673_v25 = vmul.f32 %v657_v15, %v1233_v54  ;;  %v665_v27 = vmul.f32 0.5, %v649_v16  ;;  %v647_v47 = vadd.f32 1.0, %v1034_v17  ;;  %v687_v17 = vld [vmem:[#allocation2 + $0x8] sm:$0xff] }
 0x11a   : > { %v1038_v29 = vpop.eup %1037  ;;  %1045 = vtanh.f32 %v621_v43  ;;  %v706_v31 = vsel %vm702_vm2, %v671_v21, 0.0  ;;  %v676_v32 = vmul.f32 %v660_v22, %v1260_v14  ;;  %v658_v33 = vmul.f32 0.5, %v642_v48  ;;  %v689_v43 = vld [vmem:[#allocation2 + $0x18] sm:$0xff] }
 0x11b   : > { %728 = vadd.xlane.f32.xlu1 %v727_v18  ;;  %v1040_v30 = vpop.eup %1039  ;;  %v650_v56 = vadd.f32 1.0, %v1036_v23  ;;  %v712_v36 = vsel %vm702_vm2, %v673_v25, 0.0  ;;  %v681_v38 = vmul.f32 %v665_v27, %v1235_v55  ;;  %v663_v39 = vmul.f32 0.5, %v647_v47  ;;  %v692_v25 = vld [vmem:[#allocation2 + $0x30] sm:$0xff] }
 0x11c   : > { %704 = vadd.xlane.f32.xlu0 %v703_v24  ;;  %v1042_v37 = vpop.eup %1041  ;;  %v645_v54 = vadd.f32 1.0, %v1038_v29  ;;  %v721_v40 = vsel %vm702_vm2, %v676_v32, 0.0  ;;  %v674_v41 = vmul.f32 %v658_v33, %v1264_v19  ;;  %v652_v46 = vadd.f32 1.0, %v1040_v30  ;;  %v697_v29 = vld [vmem:[#allocation2 + $0x58] sm:$0xff] }
 0x11d   : > { %v666_v42 = vmul.f32 0.5, %v650_v56  ;;  %v1044_v49 = vpop.eup %1043  ;;  %v736_v14 = vsel %vm702_vm2, %v681_v38, 0.0  ;;  %v679_v34 = vmul.f32 %v663_v39, %v1248_v63  ;;  %v643_v51 = vadd.f32 1.0, %v1042_v37 }
 0x11e   : > { %v661_v50 = vmul.f32 0.5, %v645_v54  ;;  %v715_v55 = vsel %vm702_vm2, %v674_v41, 0.0  ;;  %v668_v53 = vmul.f32 0.5, %v652_v46  ;;  %v651_v60 = vadd.f32 1.0, %v1044_v49  ;;  %v695_v54 = vld [vmem:[#allocation2 + $0x48] sm:$0xff] }
 0x11f   : > { %707 = vadd.xlane.f32.xlu1 %v706_v31  ;;  %v682_v52 = vmul.f32 %v666_v42, %v1266_v20  ;;  %v730_v19 = vsel %vm702_vm2, %v679_v34, 0.0  ;;  %v659_v59 = vmul.f32 0.5, %v643_v51  ;;  %v1356_v18 = vstv %s803_s26  ;;  %v698_v34 = vld [vmem:[#allocation2 + $0x60] sm:$0xff] }
 0x120   : > { %713 = vadd.xlane.f32.xlu0 %v712_v36  ;;  %v677_v58 = vmul.f32 %v661_v50, %v1270_v26  ;;  %v684_v63 = vmul.f32 %v668_v53, %v1272_v28  ;;  %v667_v20 = vmul.f32 0.5, %v651_v60  ;;  %v690_v36 = vld [vmem:[#allocation2 + $0x20] sm:$0xff]  ;;  %v700_v60 = vld [vmem:[#allocation2 + $0x70] sm:$0xff] }
 0x121   : > { %v739_v61 = vsel %vm702_vm2, %v682_v52, 0.0  ;;  %v675_v1 = vmul.f32 %v659_v59, %v1281_v35  ;;  %v696_v35 = vld [vmem:[#allocation2 + $0x50] sm:$0xff] }
 0x122   : > { %v724_v0 = vsel %vm702_vm2, %v677_v58, 0.0  ;;  %v745_v3 = vsel %vm702_vm2, %v684_v63, 0.0  ;;  %v683_v4 = vmul.f32 %v667_v20, %v1288_v45  ;;  %v686_v45 = vld [vmem:[#allocation2] sm:$0xff] }
 0x123   : > { %722 = vadd.xlane.f32.xlu1 %v721_v40  ;;  %v718_v26 = vsel %vm702_vm2, %v675_v1, 0.0 }
 0x124   : > { %737 = vadd.xlane.f32.xlu0 %v736_v14  ;;  %v1046_v57 = vpop.eup %1045  ;;  %v742_v6 = vsel %vm702_vm2, %v683_v4, 0.0 }
 0x125   : > { %v653_v2 = vadd.f32 1.0, %v1046_v57 }
 0x127   : > { %716 = vadd.xlane.f32.xlu1 %v715_v55  ;;  %v669_v5 = vmul.f32 0.5, %v653_v2  ;;  %v693_v55 = vld [vmem:[#allocation2 + $0x38] sm:$0xff] }
 0x128   : > { %731 = vadd.xlane.f32.xlu0 %v730_v19 }
 0x129   : > { %v685_v28 = vmul.f32 %v669_v5, %v1301_v62 }
 0x12b   : > { %740 = vadd.xlane.f32.xlu1 %v739_v61  ;;  %v748_v7 = vsel %vm702_vm2, %v685_v28, 0.0  ;;  %v699_v28 = vld [vmem:[#allocation2 + $0x68] sm:$0xff] }
 0x12c   : > { %725 = vadd.xlane.f32.xlu0 %v724_v0  ;;  %v691_v0 = vld [vmem:[#allocation2 + $0x28] sm:$0xff] }
 0x12f   : > { %746 = vadd.xlane.f32.xlu1 %v745_v3 }
 0x130   : > { %719 = vadd.xlane.f32.xlu0 %v718_v26 }
 0x134   : > { %743 = vadd.xlane.f32.xlu0 %v742_v6 }
 0x138   : > { %749 = vadd.xlane.f32.xlu0 %v748_v7 }
 0x1a4   : > { %v735_v9 = vpop.xlane.xlu1 %734 }
 0x1a5   : > { %v761_v11 = vadd.f32 %v735_v9, %v696_v35  ;;  %v711_v10 = vpop.xlane.xlu0 %710 }
 0x1a6   : > { %v753_v12 = vadd.f32 %v711_v10, %v688_v8 }
 0x1a7   : > { %778 = vst.msk [vmem:[#allocation2 + $0x50] sm:$0xff] %vm227_vm1, %v761_v11 }
 0x1a8   : > { %770 = vst.msk [vmem:[#allocation2 + $0x10] sm:$0xff] %vm227_vm1, %v753_v12  ;;  %v729_v13 = vpop.xlane.xlu1 %728  ;;  %v701_v12 = vld [vmem:[#allocation2 + $0x78] sm:$0xff] }
 0x1a9   : > { %v759_v62 = vadd.f32 %v729_v13, %v694_v44  ;;  %v705_v15 = vpop.xlane.xlu0 %704 }
 0x1aa   : > { %v751_v16 = vadd.f32 %v705_v15, %v686_v45 }
 0x1ab   : > { %776 = vst.msk [vmem:[#allocation2 + $0x40] sm:$0xff] %vm227_vm1, %v759_v62 }
 0x1ac   : > { %768 = vst.msk [vmem:[#allocation2] sm:$0xff] %vm227_vm1, %v751_v16  ;;  %v708_v21 = vpop.xlane.xlu1 %707 }
 0x1ad   : > { %v752_v22 = vadd.f32 %v708_v21, %v687_v17  ;;  %v714_v48 = vpop.xlane.xlu0 %713 }
 0x1ae   : > { %v797_v23 = vld [vmem:[#allocation2 + $0x50] sm:$0xff]  ;;  %v754_v24 = vadd.f32 %v714_v48, %v689_v43 }
 0x1af   : > { %v815_v27 = vmul.f32 %v1356_v18, %v797_v23  ;;  %v789_v47 = vld [vmem:[#allocation2 + $0x10] sm:$0xff]  ;;  %769 = vst.msk [vmem:[#allocation2 + $0x8] sm:$0xff] %vm227_vm1, %v752_v22 }
 0x1b0   : > { %v807_v30 = vmul.f32 %v1356_v18, %v789_v47  ;;  %771 = vst.msk [vmem:[#allocation2 + $0x18] sm:$0xff] %vm227_vm1, %v754_v24  ;;  %v723_v31 = vpop.xlane.xlu1 %722 }
 0x1b1   : > { %831 = vst.msk [vmem:[%s1362_s30 + $0x50] sm:$0xff] %vm227_vm1, %v815_v27  ;;  %v757_v32 = vadd.f32 %v723_v31, %v692_v25  ;;  %v738_v33 = vpop.xlane.xlu0 %737 }
 0x1b2   : > { %823 = vst.msk [vmem:[%s1362_s30 + $0x10] sm:$0xff] %vm227_vm1, %v807_v30  ;;  %v795_v56 = vld [vmem:[#allocation2 + $0x40] sm:$0xff]  ;;  %v762_v37 = vadd.f32 %v738_v33, %v697_v29 }
 0x1b3   : > { %v813_v38 = vmul.f32 %v1356_v18, %v795_v56  ;;  %v787_v39 = vld [vmem:[#allocation2] sm:$0xff]  ;;  %774 = vst.msk [vmem:[#allocation2 + $0x30] sm:$0xff] %vm227_vm1, %v757_v32 }
 0x1b4   : > { %v805_v40 = vmul.f32 %v1356_v18, %v787_v39  ;;  %779 = vst.msk [vmem:[#allocation2 + $0x58] sm:$0xff] %vm227_vm1, %v762_v37  ;;  %v717_v41 = vpop.xlane.xlu1 %716 }
 0x1b5   : > { %829 = vst.msk [vmem:[%s1362_s30 + $0x40] sm:$0xff] %vm227_vm1, %v813_v38  ;;  %v755_v42 = vadd.f32 %v717_v41, %v690_v36  ;;  %v732_v46 = vpop.xlane.xlu0 %731 }
 0x1b6   : > { %821 = vst.msk [vmem:[%s1362_s30] sm:$0xff] %vm227_vm1, %v805_v40  ;;  %v788_v49 = vld [vmem:[#allocation2 + $0x8] sm:$0xff]  ;;  %v760_v14 = vadd.f32 %v732_v46, %v695_v54 }
 0x1b7   : > { %v806_v50 = vmul.f32 %v1356_v18, %v788_v49  ;;  %v790_v51 = vld [vmem:[#allocation2 + $0x18] sm:$0xff]  ;;  %772 = vst.msk [vmem:[#allocation2 + $0x20] sm:$0xff] %vm227_vm1, %v755_v42 }
 0x1b8   : > { %v808_v52 = vmul.f32 %v1356_v18, %v790_v51  ;;  %777 = vst.msk [vmem:[#allocation2 + $0x48] sm:$0xff] %vm227_vm1, %v760_v14  ;;  %v741_v53 = vpop.xlane.xlu1 %740 }
 0x1b9   : > { %822 = vst.msk [vmem:[%s1362_s30 + $0x8] sm:$0xff] %vm227_vm1, %v806_v50  ;;  %v763_v57 = vadd.f32 %v741_v53, %v698_v34  ;;  %v726_v19 = vpop.xlane.xlu0 %725 }
 0x1ba   : > { %824 = vst.msk [vmem:[%s1362_s30 + $0x18] sm:$0xff] %vm227_vm1, %v808_v52  ;;  %v793_v58 = vld [vmem:[#allocation2 + $0x30] sm:$0xff]  ;;  %v758_v59 = vadd.f32 %v726_v19, %v693_v55 }
 0x1bb   : > { %v811_v61 = vmul.f32 %v1356_v18, %v793_v58  ;;  %v798_v63 = vld [vmem:[#allocation2 + $0x58] sm:$0xff]  ;;  %780 = vst.msk [vmem:[#allocation2 + $0x60] sm:$0xff] %vm227_vm1, %v763_v57 }
 0x1bc   : > { %v816_v1 = vmul.f32 %v1356_v18, %v798_v63  ;;  %775 = vst.msk [vmem:[#allocation2 + $0x38] sm:$0xff] %vm227_vm1, %v758_v59  ;;  %v747_v20 = vpop.xlane.xlu1 %746 }
 0x1bd   : > { %827 = vst.msk [vmem:[%s1362_s30 + $0x30] sm:$0xff] %vm227_vm1, %v811_v61  ;;  %v765_v2 = vadd.f32 %v747_v20, %v700_v60  ;;  %v720_v3 = vpop.xlane.xlu0 %719 }
 0x1be   : > { %832 = vst.msk [vmem:[%s1362_s30 + $0x58] sm:$0xff] %vm227_vm1, %v816_v1  ;;  %v791_v26 = vld [vmem:[#allocation2 + $0x20] sm:$0xff]  ;;  %v756_v4 = vadd.f32 %v720_v3, %v691_v0 }
 0x1bf   : > { %v809_v5 = vmul.f32 %v1356_v18, %v791_v26  ;;  %v796_v6 = vld [vmem:[#allocation2 + $0x48] sm:$0xff]  ;;  %782 = vst.msk [vmem:[#allocation2 + $0x70] sm:$0xff] %vm227_vm1, %v765_v2 }
 0x1c0   : > { %v814_v7 = vmul.f32 %v1356_v18, %v796_v6  ;;  %773 = vst.msk [vmem:[#allocation2 + $0x28] sm:$0xff] %vm227_vm1, %v756_v4 }
 0x1c1   : > { %825 = vst.msk [vmem:[%s1362_s30 + $0x20] sm:$0xff] %vm227_vm1, %v809_v5  ;;  %v744_v35 = vpop.xlane.xlu0 %743 }
 0x1c2   : > { %830 = vst.msk [vmem:[%s1362_s30 + $0x48] sm:$0xff] %vm227_vm1, %v814_v7  ;;  %v799_v8 = vld [vmem:[#allocation2 + $0x60] sm:$0xff]  ;;  %v764_v9 = vadd.f32 %v744_v35, %v699_v28 }
 0x1c3   : > { %v817_v11 = vmul.f32 %v1356_v18, %v799_v8  ;;  %v794_v10 = vld [vmem:[#allocation2 + $0x38] sm:$0xff] }
 0x1c4   : > { %v812_v44 = vmul.f32 %v1356_v18, %v794_v10  ;;  %781 = vst.msk [vmem:[#allocation2 + $0x68] sm:$0xff] %vm227_vm1, %v764_v9 }
 0x1c5   : > { %833 = vst.msk [vmem:[%s1362_s30 + $0x60] sm:$0xff] %vm227_vm1, %v817_v11  ;;  %v750_v45 = vpop.xlane.xlu0 %749 }
 0x1c6   : > { %828 = vst.msk [vmem:[%s1362_s30 + $0x38] sm:$0xff] %vm227_vm1, %v812_v44  ;;  %v801_v13 = vld [vmem:[#allocation2 + $0x70] sm:$0xff]  ;;  %v766_v62 = vadd.f32 %v750_v45, %v701_v12 }
 0x1c7   : > { %v819_v15 = vmul.f32 %v1356_v18, %v801_v13  ;;  %v792_v16 = vld [vmem:[#allocation2 + $0x28] sm:$0xff] }
 0x1c8   : > { %v810_v17 = vmul.f32 %v1356_v18, %v792_v16  ;;  %783 = vst.msk [vmem:[#allocation2 + $0x78] sm:$0xff] %vm227_vm1, %v766_v62 }
 0x1c9   : > { %835 = vst.msk [vmem:[%s1362_s30 + $0x70] sm:$0xff] %vm227_vm1, %v819_v15 }
 0x1ca   : > { %826 = vst.msk [vmem:[%s1362_s30 + $0x28] sm:$0xff] %vm227_vm1, %v810_v17 }
 0x1cb   : > { %v800_v43 = vld [vmem:[#allocation2 + $0x68] sm:$0xff] }
 0x1cc   : > { %v818_v21 = vmul.f32 %v1356_v18, %v800_v43 }
 0x1ce   : > { %834 = vst.msk [vmem:[%s1362_s30 + $0x68] sm:$0xff] %vm227_vm1, %v818_v21 }
 0x1cf   : > { %v802_v22 = vld [vmem:[#allocation2 + $0x78] sm:$0xff] }
 0x1d0   : > { %v820_v48 = vmul.f32 %v1356_v18, %v802_v22 }
 0x1d2   : > { %836 = vst.msk [vmem:[%s1362_s30 + $0x78] sm:$0xff] %vm227_vm1, %v820_v48 }
 0x1d3 PF: > { %s15_s19 = sadd.s32 1, %s1069_s19   ;;  %s1438_s17 = smov %s1065_s18 }
 0x1d4   : > { %p12_p5 = scmp.ge.s32.totalorder %s15_s19, 4   ;;  %s1439_s18 = smov %s1441_s0 }
 0x1d6   :  { %14 = sbr.rel (!%p12_p5) target bundleno = 2 (0x2), region = 74 }

</bundles_post_ra>
